<compile_context>
chip_gen: v7x
topology: tpu7x:2x2x1
jax: 0.10.0
libtpu: 0.0.40
codegen_flags: <defaults>
</compile_context>

<pallas_src>
import functools

import jax
import jax.numpy as jnp
from jax.experimental import pallas as pl
from jax.experimental.pallas import tpu as pltpu


def _round_up(x: int, m: int) -> int:
    return ((x + m - 1) // m) * m


def _patch_embed_kernel(x_ref, w_ref, b_ref, o_ref):
    """One-shot tile: o = cast_bf16(x @ w + b); bf16 operands, f32 accumulate + bias."""
    acc = jnp.dot(x_ref[...], w_ref[...], preferred_element_type=jnp.float32)
    bias = b_ref[pl.program_id(1)]          # (1, tn) f32, resident in VMEM (no per-step DMA)
    o_ref[...] = (acc + bias).astype(o_ref.dtype)


def patch_embed_matmul(x, w, b, *, tm=256, tn_max=1024, out_dtype=jnp.bfloat16):
    """x: [M, K], w: [K, N], b: [1, N] -> [M, N] (out_dtype) on the MXU via Pallas."""
    M, K = x.shape
    Kw, N = w.shape
    assert K == Kw and b.shape == (1, N)

    # bf16 operands for the MXU (halves HBM read bytes); bias stays f32 for the epilogue.
    x = x.astype(jnp.bfloat16)
    w = w.astype(jnp.bfloat16)
    b = b.astype(jnp.float32)

    # Tile sizes: clamp tm to the 8-aligned problem size; full-width N tiles when they fit.
    tm_eff = min(tm, _round_up(M, 8))
    K_pad = _round_up(K, 128)
    N_pad = _round_up(N, 128)
    if N_pad <= tn_max:
        tn_eff = N_pad
    elif N_pad % 512 == 0:
        tn_eff = 512
    elif N_pad % 256 == 0:
        tn_eff = 256
    else:
        tn_eff = 128
    M_pad = _round_up(M, tm_eff)

    if (M_pad, K_pad) != (M, K):
        x = jnp.pad(x, ((0, M_pad - M), (0, K_pad - K)))
    if (K_pad, N_pad) != (K, N):
        w = jnp.pad(w, ((0, K_pad - K), (0, N_pad - N)))
    if N_pad != N:
        b = jnp.pad(b, ((0, 0), (0, N_pad - N)))

    gm = M_pad // tm_eff
    gn = N_pad // tn_eff
    # Bias reshaped so each output-column tile j reads b_tiles[j] : (1, tn_eff).
    b_tiles = b.reshape(gn, 1, tn_eff)

    # VMEM budget: double-buffered bf16 input/output tiles + resident f32 bias.
    # v7x has only 64 MiB VMEM per TensorCore -> set the limit explicitly with headroom.
    tile_bytes = 2 * (tm_eff * K_pad + K_pad * tn_eff + tm_eff * tn_eff) * 2 + gn * 8 * tn_eff * 4
    vmem_limit = int(min(max(2 * tile_bytes, 8 << 20), 48 << 20))

    flops = 2 * M_pad * K_pad * N_pad
    bytes_accessed = (M_pad * K_pad + K_pad * N_pad + M_pad * N_pad) * 2 + N_pad * 4

    out = pl.pallas_call(
        _patch_embed_kernel,
        out_shape=jax.ShapeDtypeStruct((M_pad, N_pad), out_dtype),
        grid_spec=pltpu.PrefetchScalarGridSpec(
            num_scalar_prefetch=0,
            grid=(gm, gn),
            in_specs=[
                pl.BlockSpec((tm_eff, K_pad), lambda i, j: (i, 0)),
                pl.BlockSpec((K_pad, tn_eff), lambda i, j: (0, j)),
                # Whole bias lives in VMEM for the duration of the kernel.
                pl.BlockSpec(memory_space=pltpu.MemorySpace.VMEM),
            ],
            out_specs=pl.BlockSpec((tm_eff, tn_eff), lambda i, j: (i, j)),
        ),
        compiler_params=pltpu.CompilerParams(
            dimension_semantics=("parallel", "parallel"),
            vmem_limit_bytes=vmem_limit,
        ),
        cost_estimate=pl.CostEstimate(
            flops=flops, transcendentals=0, bytes_accessed=bytes_accessed
        ),
    )(x, w, b_tiles)

    if (M_pad, N_pad) != (M, N):
        out = out[:M, :N]
    return out


@functools.partial(jax.jit, static_argnames=("patch_size",))
def video_patch_embed(video_values, proj_w, proj_b, *, patch_size):
    """[B, T, C, H, W] -> [B, T*Hp*Wp, D] patch features (bf16)."""
    B, T, C, H, W = video_values.shape
    P = patch_size
    hp, wp = H // P, W // P

    # Cast to bf16 *before* the patchify relayout so the extra HBM pass is half width.
    v = video_values.astype(jnp.bfloat16)
    x = v.reshape(B, T, C, hp, P, wp, P)
    x = x.transpose(0, 1, 3, 5, 2, 4, 6)          # [B, T, hp, wp, C, P, P]
    x = x.reshape(B * T * hp * wp, C * P * P)     # [M, K]

    feats = patch_embed_matmul(x, proj_w, proj_b)  # [M, D] bf16
    return feats.reshape(B, T * hp * wp, -1)


class VideoBackbonePallas:
    """Minimal concrete VideoBackbone whose featurizer hot path is a Pallas kernel."""

    def __init__(
        self,
        video_backbone_id: str = "synthetic-patch-embed",
        image_resize_strategy: str = "resize-naive",
        default_image_size: int = 16,
        num_frames: int = 4,
        in_channels: int = 4,
        patch_size: int = 8,
        embed_dim: int = 128,
    ):
        self.identifier = video_backbone_id
        self.image_resize_strategy = image_resize_strategy
        self.default_image_size = default_image_size
        self.num_frames = num_frames
        self.in_channels = in_channels
        self.patch_size = patch_size
        self._embed_dim = embed_dim

        hp = default_image_size // patch_size
        self._spatial_resolution = hp * hp
        self._num_patches = num_frames * self._spatial_resolution

        # Deterministic synthetic parameters (Conv2d(kernel=stride=patch) equivalent):
        #   weight flattened as [K = C*P*P, D], bias as [1, D].  Master copies in f32.
        key = jax.random.PRNGKey(0)
        kw, kb = jax.random.split(key)
        k_dim = in_channels * patch_size * patch_size
        self.proj_w = (
            jax.random.normal(kw, (k_dim, embed_dim), dtype=jnp.float32)
            * (1.0 / jnp.sqrt(k_dim))
        )
        self.proj_b = jax.random.normal(kb, (1, embed_dim), dtype=jnp.float32) * 0.01

    # ---- abstract-property analogues ----
    @property
    def default_video_resolution(self):
        return (self.num_frames, self.in_channels,
                self.default_image_size, self.default_image_size)

    @property
    def embed_dim(self):
        return self._embed_dim

    @property
    def num_patches(self):
        return self._num_patches

    @property
    def spatial_resolution(self):
        return self._spatial_resolution

    @property
    def temporal_resolution(self):
        assert self.num_patches % self.spatial_resolution == 0
        return self.num_patches // self.spatial_resolution

    @property
    def half_precision_dtype(self):
        return jnp.bfloat16

    # ---- forward ----
    def forward(self, video_values, is_image):
        """video_values: [B, T, C, H, W] float32; is_image: [B] bool (unused, see TODO)."""
        del is_image  # TODO(synk): subclass-specific modulation not defined in the base.
        return video_patch_embed(
            video_values, self.proj_w, self.proj_b, patch_size=self.patch_size
        )


if __name__ == "__main__":
    backbone = VideoBackbonePallas(
        default_image_size=16, num_frames=4, in_channels=4,
        patch_size=8, embed_dim=128,
    )

    key = jax.random.PRNGKey(0)
    kv, ki = jax.random.split(key)
    B, T, C, H, W = 2, backbone.num_frames, backbone.in_channels, 16, 16
    video_values = jax.random.normal(kv, (B, T, C, H, W), dtype=jnp.float32)
    is_image = jnp.zeros((B,), dtype=jnp.bool_)

    out = backbone.forward(video_values, is_image)
    out = jax.block_until_ready(out)

    # Reference check against plain-JAX f32 matmul (kernel runs in bf16 -> loose tol).
    P = backbone.patch_size
    hp = wp = H // P
    x = video_values.reshape(B, T, C, hp, P, wp, P).transpose(0, 1, 3, 5, 2, 4, 6)
    x = x.reshape(B * T * hp * wp, C * P * P).astype(jnp.float32)
    ref = (x @ backbone.proj_w + backbone.proj_b).reshape(
        B, backbone.num_patches, backbone.embed_dim
    )
    assert out.shape == (B, backbone.num_patches, backbone.embed_dim), out.shape
    assert out.dtype == backbone.half_precision_dtype, out.dtype
    assert jnp.allclose(out.astype(jnp.float32), ref, atol=3e-2, rtol=3e-2)

    print("KERNEL_OK")
</pallas_src>

<mosaic_0001>
module attributes {stable_mosaic.version = 11 : i64} {
  func.func @_patch_embed_kernel(%arg0: i32, %arg1: i32, %arg2: memref<32x256xbf16, #tpu.memory_space<vmem>>, %arg3: memref<256x128xbf16, #tpu.memory_space<vmem>>, %arg4: memref<1x1x128xf32, #tpu.memory_space<vmem>>, %arg5: memref<32x128xbf16, #tpu.memory_space<vmem>>) attributes {dimension_semantics = [#tpu.dimension_semantics<parallel>, #tpu.dimension_semantics<parallel>], iteration_bounds = array<i64: 1, 1>, scalar_prefetch = 0 : i64, scratch_operands = 0 : i64, tpu.core_type = #tpu.core_type<tc>, window_params = [{transform_indices = @transform_0, window_bounds = array<i64: 32, 256>}, {transform_indices = @transform_1, window_bounds = array<i64: 256, 128>}, {pipeline_mode = #tpu.pipeline_mode<synchronous>, transform_indices = @transform_2, window_bounds = array<i64: 1, 1, 128>}, {transform_indices = @transform_3, window_bounds = array<i64: 32, 128>}]} {
    %c0 = arith.constant 0 : index
    %c0_0 = arith.constant 0 : index
    %0 = vector.load %arg2[%c0, %c0_0] : memref<32x256xbf16, #tpu.memory_space<vmem>>, vector<32x256xbf16>
    %c0_1 = arith.constant 0 : index
    %c0_2 = arith.constant 0 : index
    %1 = vector.load %arg3[%c0_1, %c0_2] : memref<256x128xbf16, #tpu.memory_space<vmem>>, vector<256x128xbf16>
    %cst = arith.constant dense<0.000000e+00> : vector<32x128xf32>
    %2 = tpu.matmul %0, %1, %cst {dimension_numbers = #tpu.dot_dimension_numbers<[1], [0], [0], [1], [0, 0, 1, 1], [], []>} : vector<32x256xbf16>, vector<256x128xbf16>, vector<32x128xf32> -> vector<32x128xf32>
    %3 = arith.index_cast %arg1 : i32 to index
    %c0_3 = arith.constant 0 : index
    %c0_4 = arith.constant 0 : index
    %4 = vector.load %arg4[%3, %c0_3, %c0_4] : memref<1x1x128xf32, #tpu.memory_space<vmem>>, vector<1x1x128xf32>
    %5 = vector.shape_cast %4 : vector<1x1x128xf32> to vector<1x128xf32>
    %6 = vector.broadcast %5 : vector<1x128xf32> to vector<32x128xf32>
    %7 = arith.addf %2, %6 : vector<32x128xf32>
    %8 = arith.truncf %7 : vector<32x128xf32> to vector<32x128xbf16>
    %c0_5 = arith.constant 0 : index
    %c0_6 = arith.constant 0 : index
    %9 = vector.load %arg5[%c0_5, %c0_6] : memref<32x128xbf16, #tpu.memory_space<vmem>>, vector<32x128xbf16>
    tpu.vector_store %arg5[%c0_5, %c0_6], %8 {strides = array<i32>} : memref<32x128xbf16, #tpu.memory_space<vmem>>, vector<32x128xbf16>,
    return
  }
  func.func @transform_0(%arg0: i32, %arg1: i32) -> (i32, i32) {
    %c0_i32 = arith.constant 0 : i32
    %c0_i32_0 = arith.constant 0 : i32
    return %arg0, %c0_i32 : i32, i32
  }
  func.func @transform_1(%arg0: i32, %arg1: i32) -> (i32, i32) {
    %c0_i32 = arith.constant 0 : i32
    %c0_i32_0 = arith.constant 0 : i32
    return %c0_i32, %arg1 : i32, i32
  }
  func.func @transform_2(%arg0: i32, %arg1: i32) -> (i32, i32, i32) {
    %c0_i32 = arith.constant 0 : i32
    %c0_i32_0 = arith.constant 0 : i32
    %c0_i32_1 = arith.constant 0 : i32
    %c0_i32_2 = arith.constant 0 : i32
    return %c0_i32, %c0_i32_0, %c0_i32_1 : i32, i32, i32
  }
  func.func @transform_3(%arg0: i32, %arg1: i32) -> (i32, i32) {
    %c0_i32 = arith.constant 0 : i32
    return %arg0, %arg1 : i32, i32
  }
}

</mosaic_0001>

<bundles_post_ra>
// kernel: video_patch_embed.1
= control target key start
LH: loop header
LB: loop body
LE: loop exit
PB: predicated region body
PF: predicated region fallthrough
CT: control target
= control target key end

     0   :  { %s491_s0 = inlined_call_operand.vmem [shape: bf16[32,256], index: 0, kind: input, shape index: {}]   ;;  %s492_s1 = inlined_call_operand.vmem [shape: bf16[256,128], index: 1, kind: input, shape index: {}]   ;;  %s493_s2 = inlined_call_operand.vmem [shape: f32[1,1,128], index: 2, kind: input, shape index: {}]   ;;  %s494_s3 = inlined_call_operand.hbm [shape: bf16[32,128], index: 3, kind: output, shape index: {}]  }
   0x1   :  { %v347_v0 = vld [vmem:[%s492_s1 + $0x40] sm:$0xff]   ;;  %v349_v2 = vld [vmem:[%s492_s1 + $0x48] sm:$0xff]   ;;  %v351_v4 = vld [vmem:[%s492_s1 + $0x50] sm:$0xff]  }
   0x2   :  { %v348_v1 = vld [vmem:[%s492_s1] sm:$0xff]   ;;  %300 = vmatprep.subr.bf16.mxu0 %v347_v0  ;;  %328 = vmatprep.subr.bf16.mxu1 %v347_v0  ;;  %v350_v3 = vld [vmem:[%s492_s1 + $0x8] sm:$0xff]   ;;  %v352_v5 = vld [vmem:[%s492_s1 + $0x10] sm:$0xff]  }
   0x3   :  { %301 = vmatpush3.bf16.msra.mxu0 %v348_v1  ;;  %336 = vmatpush3.bf16.msra.mxu1 %v348_v1  ;;  %v353_v6 = vld [vmem:[%s492_s1 + $0x58] sm:$0xff]   ;;  %v355_v8 = vld [vmem:[%s492_s1 + $0x60] sm:$0xff]   ;;  %v357_v10 = vld [vmem:[%s492_s1 + $0x68] sm:$0xff]  }
   0x4   :  { %302 = vmatprep.subr.bf16.mxu0 %v349_v2  ;;  %329 = vmatprep.subr.bf16.mxu1 %v349_v2  ;;  %v354_v7 = vld [vmem:[%s492_s1 + $0x18] sm:$0xff]   ;;  %v356_v9 = vld [vmem:[%s492_s1 + $0x20] sm:$0xff]  }
   0x5   :  { %v365_v11 = vld [vmem:[%s491_s0 + $0x4] ss:$8 sps:$4 sm:$0xff]   ;;  %v368_v12 = vld [vmem:[%s491_s0 + $0x14] ss:$8 sps:$4 sm:$0xff]  }
   0x7   :  { %303 = vmatpush3.bf16.msra.mxu0 %v350_v3  ;;  %337 = vmatpush3.bf16.msra.mxu1 %v350_v3 }
   0x8   :  { %304 = vmatprep.subr.bf16.mxu0 %v351_v4  ;;  %330 = vmatprep.subr.bf16.mxu1 %v351_v4 }
   0xb   :  { %305 = vmatpush3.bf16.msra.mxu0 %v352_v5  ;;  %338 = vmatpush3.bf16.msra.mxu1 %v352_v5 }
   0xc   :  { %306 = vmatprep.subr.bf16.mxu0 %v353_v6  ;;  %331 = vmatprep.subr.bf16.mxu1 %v353_v6 }
   0xf   :  { %307 = vmatpush3.bf16.msra.mxu0 %v354_v7  ;;  %339 = vmatpush3.bf16.msra.mxu1 %v354_v7 }
  0x10   :  { %308 = vmatprep.subr.bf16.mxu0 %v355_v8  ;;  %332 = vmatprep.subr.bf16.mxu1 %v355_v8 }
  0x11   :  { %8 = vsyncpa [#allocation3], 0  ;;  %v358_v13 = vld [vmem:[%s492_s1 + $0x28] sm:$0xff]   ;;  %v359_v14 = vld [vmem:[%s492_s1 + $0x70] sm:$0xff]   ;;  %207 = vmatprep.mubr.bf16.mxu0 %v365_v11  ;;  %215 = vmatprep.mubr.bf16.mxu1 %v368_v12 }
  0x12   :  { %v360_v15 = vld [vmem:[%s492_s1 + $0x30] sm:$0xff]   ;;  %v361_v16 = vld [vmem:[%s492_s1 + $0x78] sm:$0xff]   ;;  %v363_v18 = vld [vmem:[%s491_s0] ss:$8 sps:$4 sm:$0xff]  }
  0x13   :  { %309 = vmatpush3.bf16.msra.mxu0 %v356_v9  ;;  %340 = vmatpush3.bf16.msra.mxu1 %v356_v9  ;;  %v362_v17 = vld [vmem:[%s492_s1 + $0x38] sm:$0xff]   ;;  %v260_v28 = vld [vmem:[%s493_s2] ss:$0 sm:$0xff] }
  0x14   :  { %310 = vmatprep.subr.bf16.mxu0 %v357_v10  ;;  %333 = vmatprep.subr.bf16.mxu1 %v357_v10  ;;  %v366_v19 = vld [vmem:[%s491_s0 + $0x10] ss:$8 sps:$4 sm:$0xff]   ;;  %s393_s0 = smov [#allocation2]  }
  0x15   :  { %s249_s26 = sshll.u32 %s393_s0, 4  ;;  %s250_s26 = int_to_ptr.vmem [resolvable:$true] %s249_s26 }
  0x16   :  { %s369_s27 = scalar_lea.vmem %s250_s26, 256  ;;  %p374_p1 = scmp.lt.s32.totalorder %s250_s26, %s250_s26 }
  0x17   :  { %311 = vmatpush3.bf16.msra.mxu0 %v358_v13  ;;  %341 = vmatpush3.bf16.msra.mxu1 %v358_v13  ;;  %p370_p0 = scmp.ne.s32.totalorder %s250_s26, %s369_s27  ;;  %p375_p2 = scmp.lt.s32.totalorder %s369_s27, %s369_s27 }
  0x18   :  { %312 = vmatprep.subr.bf16.mxu0 %v359_v14  ;;  %334 = vmatprep.subr.bf16.mxu1 %v359_v14 }
  0x19   :  { %p376_p3 = por %p375_p2, %p374_p1 }
  0x1b   :  { %313 = vmatpush3.bf16.msra.mxu0 %v360_v15  ;;  %342 = vmatpush3.bf16.msra.mxu1 %v360_v15  ;;  %p377_p4 = pnand %p376_p3, %p370_p0 }
  0x1c   :  { %314 = vmatprep.subr.bf16.mxu0 %v361_v16  ;;  %335 = vmatprep.subr.bf16.mxu1 %v361_v16 }
  0x1f   :  { %315 = vmatpush3.bf16.msra.mxu0 %v362_v17  ;;  %343 = vmatpush3.bf16.msra.mxu1 %v362_v17 }
  0x22   :  { %208 = vmatmul.mubr.bf16.vlgmr.msra.gmra.mrb[0].mxu0 %v363_v18  ;;  %216 = vmatmul.mubr.bf16.vlgmr.msra.gmra.mrb[0].mxu1 %v366_v19 }
  0xf5   :  { %v316_v20 = vpop.f32.mrb[0].mxu0  ;;  %v322_v21 = vpop.f32.mrb[0].mxu1 }
  0xf6   :  { %v317_v22 = vpop.f32.mrb[1].mxu0  ;;  %v323_v23 = vpop.f32.mrb[1].mxu1 }
  0xf7   :  { %v318_v24 = vadd.f32 %v317_v22, %v316_v20  ;;  %v324_v25 = vadd.f32 %v323_v23, %v322_v21  ;;  %v319_v26 = vpop.f32.mrb[2].mxu0  ;;  %v325_v27 = vpop.f32.mrb[2].mxu1 }
  0xf8   :  { %v320_v29 = vpop.f32.mrb[3].mxu0  ;;  %v326_v30 = vpop.f32.mrb[3].mxu1 }
  0xf9   :  { %v321_v31 = vadd.f32 %v320_v29, %v319_v26  ;;  %v327_v32 = vadd.f32 %v326_v30, %v325_v27  ;;  %v210_v33 = vadd.f32 %v318_v24, %v260_v28  ;;  %v218_v34 = vadd.f32 %v324_v25, %v260_v28 }
  0xfb   :  { %v213_v35 = vadd.f32 %v321_v31, %v260_v28  ;;  %v221_v36 = vadd.f32 %v327_v32, %v260_v28 }
  0xfd   :  { %v292_v37 = vpack.c.bf16 %v213_v35, %v210_v33  ;;  %v297_v38 = vpack.c.bf16 %v221_v36, %v218_v34 }
  0xff   :  { %293 = vst [vmem:[#allocation2] sm:$0xff] %v292_v37   ;;  %299 = vst [vmem:[#allocation2 + $0x8] sm:$0xff] %v297_v38  }
 0x100   :  { %380 = shalt.err (!%p377_p4)
}
 0x101   :  { %s381_s29 = scalar_lea.hbm %s494_s3, 256 }
 0x102   :  { %p382_p5 = scmp.ne.s32.totalorder %s494_s3, %s381_s29  ;;  %p385_p6 = scmp.lt.u32.totalorder %s381_s29, %s494_s3 }
 0x104   :  { %p387_p7 = pnand %p385_p6, %p382_p5 }
 0x106   :  { %390 = shalt.err (!%p387_p7)
}
 0x107   :  { %s394_s7 = smov 64   ;;  %s395_s8 = smov 4  }
 0x108   :  { %255 = dma.vmem_to_hbm [thread:$0]  %s250_s26, 256, %s494_s3, [#allocation3], %s394_s7, %s394_s7, %s395_s8  }
 0x109   :  { %391 = dma.done.wait [#allocation3], 256  }
 0x10a   :  { %392 = vsyncadd [#allocation3], 4294967040 }
 0x10b   :  { %259 = vsyncpa [#allocation3], 1 }

</bundles_post_ra>
